<compile_context>
chip_gen: v7x
topology: tpu7x:2x2x1
jax: 0.10.0
libtpu: 0.0.40
codegen_flags: <defaults>
</compile_context>

<pallas_src>
import jax
import jax.numpy as jnp
from jax.experimental import pallas as pl
from jax.experimental.pallas import tpu as pltpu


def _round_up(x, m):
    return ((x + m - 1) // m) * m


def _choose_batch_tile(batch):
    """Pick (batch_tile, padded_batch).

    Sublane-aligned (multiple of 8).  Prefer exactly 2 grid steps at zero
    extra padding when the batch allows it (both v7x TensorCores get work),
    otherwise a single step; for very large batches use the biggest tile
    <= 512 that minimizes padding waste.
    """
    b_pad = _round_up(batch, 8)
    cap = 512
    if b_pad <= 2 * cap:
        if b_pad >= 16 and b_pad % 16 == 0:
            return b_pad // 2, b_pad          # 2 parallel steps, zero waste
        return b_pad, b_pad                   # single step
    best = None
    for tb in (512, 256, 128, 64):
        bp = _round_up(b_pad, tb)
        key = (bp - b_pad, -tb)               # min padding, then biggest tile
        if best is None or key < best[0]:
            best = (key, tb, bp)
    return best[1], best[2]


def _make_dense_block_kernel(num_convs, c_in, c_out, c_in_pad, c_pad, k_pads):
    """Fused DenseBlock kernel: all layers + concat, slab == output block."""

    def kernel(x_ref, *refs):
        # refs = (w0, b0, w1, b1, ..., o_ref)
        o_ref = refs[2 * num_convs]

        # Lane-dense store of the channel-padded input tile = the "X" part of
        # the concat.  The pad lanes [c_in, c_in_pad) arrive as zeros.
        o_ref[:, :c_in_pad] = x_ref[...].astype(o_ref.dtype)

        written_hi = c_in_pad                 # lanes guaranteed written (this step)
        off = c_in
        for i in range(num_convs):            # statically unrolled
            k_pad = k_pads[i]
            if k_pad > written_hi:
                # Aligned LHS prefix reaches lanes not written yet this step:
                # zero just that gap (static; never happens for c_total<=128).
                o_ref[:, written_hi:k_pad] = jnp.zeros(
                    (o_ref.shape[0], k_pad - written_hi), o_ref.dtype)
                written_hi = k_pad
            w = refs[2 * i][...]                          # (k_pad, c_out), K-zero-padded
            b = refs[2 * i + 1][...]                      # (1, c_out)
            acc = jnp.dot(o_ref[:, :k_pad], w,
                          preferred_element_type=jnp.float32) + b
            # LeakyReLU, PyTorch default slope 0.01: max(x, 0.01*x).
            y = jnp.maximum(acc, 0.01 * acc)
            o_ref[:, off:off + c_out] = y.astype(o_ref.dtype)
            off += c_out
            written_hi = max(written_hi, off)

        # Zero any never-written output tail (static; none for these shapes —
        # the tail up to c_pad was already covered by the padded-x store).
        if written_hi < c_pad:
            o_ref[:, written_hi:] = jnp.zeros(
                (o_ref.shape[0], c_pad - written_hi), o_ref.dtype)

    return kernel


def dense_block_forward(x, params):
    """X -> for each block: Y = leaky_relu(Linear(X)); X = concat([X, Y], -1).

    Entire DenseBlock is one pallas_call. `params` is a list of (w, b) with
    w pre-transposed to (in_c, out_c) and b of shape (1, out_c).
    """
    B, c_in = x.shape
    num_convs = len(params)
    c_out = params[0][0].shape[1]
    c_total = c_in + num_convs * c_out
    c_pad = _round_up(c_total, 128)           # lane-dense output width
    c_in_pad = _round_up(c_in, 128)           # lane-dense x store width
    k_pads = [_round_up(c_in + i * c_out, 128) for i in range(num_convs)]

    tb, b_pad = _choose_batch_tile(B)

    x_p = x
    if (b_pad, c_in_pad) != (B, c_in):
        x_p = jnp.pad(x, ((0, b_pad - B), (0, c_in_pad - c_in)))

    flat_inputs = [x_p]
    in_specs = [pl.BlockSpec((tb, c_in_pad), lambda i: (i, 0))]
    for li, (w, b) in enumerate(params):
        k_in = w.shape[0]
        k_pad = k_pads[li]
        # Zero-pad K so the in-kernel LHS slice is lane-aligned; pad rows
        # multiply against zero so they contribute exactly 0.
        w_p = w if k_in == k_pad else jnp.pad(w, ((0, k_pad - k_in), (0, 0)))
        flat_inputs.append(w_p)
        flat_inputs.append(b)
        # Weights/biases: full-array blocks, resident in VMEM every grid step.
        in_specs.append(pl.BlockSpec(w_p.shape, lambda i: (0, 0)))
        in_specs.append(pl.BlockSpec(b.shape, lambda i: (0, 0)))

    out = pl.pallas_call(
        _make_dense_block_kernel(num_convs, c_in, c_out, c_in_pad, c_pad,
                                 k_pads),
        out_shape=jax.ShapeDtypeStruct((b_pad, c_pad), x.dtype),
        grid=(b_pad // tb,),
        in_specs=in_specs,
        out_specs=pl.BlockSpec((tb, c_pad), lambda i: (i, 0)),
        compiler_params=pltpu.CompilerParams(
            dimension_semantics=("parallel",)),
    )(*flat_inputs)

    # Module semantics require (B, c_total); the slice is wrapper-side only
    # and skipped entirely when the padded shape already matches.
    if (b_pad, c_pad) == (B, c_total):
        return out
    return out[:B, :c_total]


def init_dense_block_params(key, num_convs, in_channels, out_channels,
                            dtype=jnp.float32):
    """Deterministic param init mirroring the PyTorch module's shapes.

    PyTorch nn.Linear(in_c, out_c) has weight (out_c, in_c) and bias (out_c,).
    We store the weight pre-transposed as (in_c, out_c) for the kernel.
    """
    params = []
    for i in range(num_convs):
        in_c = in_channels + i * out_channels
        key, kw, kb = jax.random.split(key, 3)
        bound = 1.0 / jnp.sqrt(in_c)
        w = jax.random.uniform(kw, (in_c, out_channels), dtype,
                               minval=-bound, maxval=bound)
        b = jax.random.uniform(kb, (1, out_channels), dtype,
                               minval=-bound, maxval=bound)
        params.append((w, b))
    return params


def dense_block_reference(x, params):
    """Pure-JAX reference for correctness checking."""
    for (w, b) in params:
        y = x @ w + b
        y = jnp.where(y >= 0.0, y, 0.01 * y)
        x = jnp.concatenate([x, y], axis=1)
    return x


if __name__ == "__main__":
    num_convs = 3
    in_channels = 32
    out_channels = 16
    batch = 8

    key = jax.random.PRNGKey(0)
    key, kx = jax.random.split(key)
    x = jax.random.normal(kx, (batch, in_channels), jnp.float32)
    params = init_dense_block_params(key, num_convs, in_channels, out_channels)

    fwd = jax.jit(dense_block_forward)
    out = fwd(x, params)
    out = jax.block_until_ready(out)

    expected_channels = in_channels + num_convs * out_channels
    assert out.shape == (batch, expected_channels), out.shape

    ref = dense_block_reference(x, params)
    max_err = float(jnp.max(jnp.abs(out - ref)))
    assert jnp.allclose(out, ref, atol=1e-4, rtol=1e-4), max_err

    print("KERNEL_OK")
</pallas_src>

<mosaic_0001>
module attributes {stable_mosaic.version = 11 : i64} {
  func.func @kernel(%arg0: i32, %arg1: memref<8x128xf32, #tpu.memory_space<vmem>>, %arg2: memref<128x16xf32, #tpu.memory_space<vmem>>, %arg3: memref<1x16xf32, #tpu.memory_space<vmem>>, %arg4: memref<128x16xf32, #tpu.memory_space<vmem>>, %arg5: memref<1x16xf32, #tpu.memory_space<vmem>>, %arg6: memref<128x16xf32, #tpu.memory_space<vmem>>, %arg7: memref<1x16xf32, #tpu.memory_space<vmem>>, %arg8: memref<8x128xf32, #tpu.memory_space<vmem>>) attributes {dimension_semantics = [#tpu.dimension_semantics<parallel>], iteration_bounds = array<i64: 1>, scalar_prefetch = 0 : i64, scratch_operands = 0 : i64, tpu.core_type = #tpu.core_type<tc>, window_params = [{transform_indices = @transform_0, window_bounds = array<i64: 8, 128>}, {pipeline_mode = #tpu.pipeline_mode<synchronous>, transform_indices = @transform_1, window_bounds = array<i64: 128, 16>}, {pipeline_mode = #tpu.pipeline_mode<synchronous>, transform_indices = @transform_2, window_bounds = array<i64: 1, 16>}, {pipeline_mode = #tpu.pipeline_mode<synchronous>, transform_indices = @transform_3, window_bounds = array<i64: 128, 16>}, {pipeline_mode = #tpu.pipeline_mode<synchronous>, transform_indices = @transform_4, window_bounds = array<i64: 1, 16>}, {pipeline_mode = #tpu.pipeline_mode<synchronous>, transform_indices = @transform_5, window_bounds = array<i64: 128, 16>}, {pipeline_mode = #tpu.pipeline_mode<synchronous>, transform_indices = @transform_6, window_bounds = array<i64: 1, 16>}, {transform_indices = @transform_7, window_bounds = array<i64: 8, 128>}]} {
    %c0 = arith.constant 0 : index
    %c0_0 = arith.constant 0 : index
    %0 = vector.load %arg1[%c0, %c0_0] : memref<8x128xf32, #tpu.memory_space<vmem>>, vector<8x128xf32>
    %c0_1 = arith.constant 0 : index
    %c0_2 = arith.constant 0 : index
    %1 = vector.load %arg8[%c0_1, %c0_2] : memref<8x128xf32, #tpu.memory_space<vmem>>, vector<8x128xf32>
    tpu.vector_store %arg8[%c0_1, %c0_2], %0 {strides = array<i32>} : memref<8x128xf32, #tpu.memory_space<vmem>>, vector<8x128xf32>,
    %c0_3 = arith.constant 0 : index
    %c0_4 = arith.constant 0 : index
    %2 = vector.load %arg2[%c0_3, %c0_4] : memref<128x16xf32, #tpu.memory_space<vmem>>, vector<128x16xf32>
    %c0_5 = arith.constant 0 : index
    %c0_6 = arith.constant 0 : index
    %3 = vector.load %arg3[%c0_5, %c0_6] : memref<1x16xf32, #tpu.memory_space<vmem>>, vector<1x16xf32>
    %c0_7 = arith.constant 0 : index
    %c0_8 = arith.constant 0 : index
    %4 = vector.load %arg8[%c0_7, %c0_8] : memref<8x128xf32, #tpu.memory_space<vmem>>, vector<8x128xf32>
    %cst = arith.constant dense<0.000000e+00> : vector<8x16xf32>
    %5 = tpu.matmul %4, %2, %cst {dimension_numbers = #tpu.dot_dimension_numbers<[1], [0], [0], [1], [0, 0, 1, 1], [], []>} : vector<8x128xf32>, vector<128x16xf32>, vector<8x16xf32> -> vector<8x16xf32>
    %6 = vector.broadcast %3 : vector<1x16xf32> to vector<8x16xf32>
    %7 = arith.addf %5, %6 : vector<8x16xf32>
    %cst_9 = arith.constant 0.00999999977 : f32
    %8 = vector.broadcast %cst_9 : f32 to vector<8x16xf32>
    %9 = arith.mulf %8, %7 : vector<8x16xf32>
    %10 = arith.maximumf %7, %9 : vector<8x16xf32>
    %c0_10 = arith.constant 0 : index
    %c32 = arith.constant 32 : index
    %11 = vector.load %arg8[%c0_10, %c32] : memref<8x128xf32, #tpu.memory_space<vmem>>, vector<8x16xf32>
    tpu.vector_store %arg8[%c0_10, %c32], %10 {strides = array<i32>} : memref<8x128xf32, #tpu.memory_space<vmem>>, vector<8x16xf32>,
    %c0_11 = arith.constant 0 : index
    %c0_12 = arith.constant 0 : index
    %12 = vector.load %arg4[%c0_11, %c0_12] : memref<128x16xf32, #tpu.memory_space<vmem>>, vector<128x16xf32>
    %c0_13 = arith.constant 0 : index
    %c0_14 = arith.constant 0 : index
    %13 = vector.load %arg5[%c0_13, %c0_14] : memref<1x16xf32, #tpu.memory_space<vmem>>, vector<1x16xf32>
    %c0_15 = arith.constant 0 : index
    %c0_16 = arith.constant 0 : index
    %14 = vector.load %arg8[%c0_15, %c0_16] : memref<8x128xf32, #tpu.memory_space<vmem>>, vector<8x128xf32>
    %cst_17 = arith.constant dense<0.000000e+00> : vector<8x16xf32>
    %15 = tpu.matmul %14, %12, %cst_17 {dimension_numbers = #tpu.dot_dimension_numbers<[1], [0], [0], [1], [0, 0, 1, 1], [], []>} : vector<8x128xf32>, vector<128x16xf32>, vector<8x16xf32> -> vector<8x16xf32>
    %16 = vector.broadcast %13 : vector<1x16xf32> to vector<8x16xf32>
    %17 = arith.addf %15, %16 : vector<8x16xf32>
    %cst_18 = arith.constant 0.00999999977 : f32
    %18 = vector.broadcast %cst_18 : f32 to vector<8x16xf32>
    %19 = arith.mulf %18, %17 : vector<8x16xf32>
    %20 = arith.maximumf %17, %19 : vector<8x16xf32>
    %c0_19 = arith.constant 0 : index
    %c48 = arith.constant 48 : index
    %21 = vector.load %arg8[%c0_19, %c48] : memref<8x128xf32, #tpu.memory_space<vmem>>, vector<8x16xf32>
    tpu.vector_store %arg8[%c0_19, %c48], %20 {strides = array<i32>} : memref<8x128xf32, #tpu.memory_space<vmem>>, vector<8x16xf32>,
    %c0_20 = arith.constant 0 : index
    %c0_21 = arith.constant 0 : index
    %22 = vector.load %arg6[%c0_20, %c0_21] : memref<128x16xf32, #tpu.memory_space<vmem>>, vector<128x16xf32>
    %c0_22 = arith.constant 0 : index
    %c0_23 = arith.constant 0 : index
    %23 = vector.load %arg7[%c0_22, %c0_23] : memref<1x16xf32, #tpu.memory_space<vmem>>, vector<1x16xf32>
    %c0_24 = arith.constant 0 : index
    %c0_25 = arith.constant 0 : index
    %24 = vector.load %arg8[%c0_24, %c0_25] : memref<8x128xf32, #tpu.memory_space<vmem>>, vector<8x128xf32>
    %cst_26 = arith.constant dense<0.000000e+00> : vector<8x16xf32>
    %25 = tpu.matmul %24, %22, %cst_26 {dimension_numbers = #tpu.dot_dimension_numbers<[1], [0], [0], [1], [0, 0, 1, 1], [], []>} : vector<8x128xf32>, vector<128x16xf32>, vector<8x16xf32> -> vector<8x16xf32>
    %26 = vector.broadcast %23 : vector<1x16xf32> to vector<8x16xf32>
    %27 = arith.addf %25, %26 : vector<8x16xf32>
    %cst_27 = arith.constant 0.00999999977 : f32
    %28 = vector.broadcast %cst_27 : f32 to vector<8x16xf32>
    %29 = arith.mulf %28, %27 : vector<8x16xf32>
    %30 = arith.maximumf %27, %29 : vector<8x16xf32>
    %c0_28 = arith.constant 0 : index
    %c64 = arith.constant 64 : index
    %31 = vector.load %arg8[%c0_28, %c64] : memref<8x128xf32, #tpu.memory_space<vmem>>, vector<8x16xf32>
    tpu.vector_store %arg8[%c0_28, %c64], %30 {strides = array<i32>} : memref<8x128xf32, #tpu.memory_space<vmem>>, vector<8x16xf32>,
    return
  }
  func.func @transform_0(%arg0: i32) -> (i32, i32) {
    %c0_i32 = arith.constant 0 : i32
    %c0_i32_0 = arith.constant 0 : i32
    return %arg0, %c0_i32 : i32, i32
  }
  func.func @transform_1(%arg0: i32) -> (i32, i32) {
    %c0_i32 = arith.constant 0 : i32
    %c0_i32_0 = arith.constant 0 : i32
    %c0_i32_1 = arith.constant 0 : i32
    return %c0_i32, %c0_i32_0 : i32, i32
  }
  func.func @transform_2(%arg0: i32) -> (i32, i32) {
    %c0_i32 = arith.constant 0 : i32
    %c0_i32_0 = arith.constant 0 : i32
    %c0_i32_1 = arith.constant 0 : i32
    return %c0_i32, %c0_i32_0 : i32, i32
  }
  func.func @transform_3(%arg0: i32) -> (i32, i32) {
    %c0_i32 = arith.constant 0 : i32
    %c0_i32_0 = arith.constant 0 : i32
    %c0_i32_1 = arith.constant 0 : i32
    return %c0_i32, %c0_i32_0 : i32, i32
  }
  func.func @transform_4(%arg0: i32) -> (i32, i32) {
    %c0_i32 = arith.constant 0 : i32
    %c0_i32_0 = arith.constant 0 : i32
    %c0_i32_1 = arith.constant 0 : i32
    return %c0_i32, %c0_i32_0 : i32, i32
  }
  func.func @transform_5(%arg0: i32) -> (i32, i32) {
    %c0_i32 = arith.constant 0 : i32
    %c0_i32_0 = arith.constant 0 : i32
    %c0_i32_1 = arith.constant 0 : i32
    return %c0_i32, %c0_i32_0 : i32, i32
  }
  func.func @transform_6(%arg0: i32) -> (i32, i32) {
    %c0_i32 = arith.constant 0 : i32
    %c0_i32_0 = arith.constant 0 : i32
    %c0_i32_1 = arith.constant 0 : i32
    return %c0_i32, %c0_i32_0 : i32, i32
  }
  func.func @transform_7(%arg0: i32) -> (i32, i32) {
    %c0_i32 = arith.constant 0 : i32
    %c0_i32_0 = arith.constant 0 : i32
    return %arg0, %c0_i32 : i32, i32
  }
}

</mosaic_0001>

<bundles_post_ra>
// kernel: dense_block_forward.1
= control target key start
LH: loop header
LB: loop body
LE: loop exit
PB: predicated region body
PF: predicated region fallthrough
CT: control target
= control target key end

     0   :  { %v611_v3 = vmov 0.0|0.0   ;;  %vm612_vm0 = vmmov 0   ;;  %v613_v6 = vmov 0.0   ;;  %s853_s0 = inlined_call_operand.vmem [shape: f32[8,128], index: 0, kind: input, shape index: {}]   ;;  %s854_s1 = inlined_call_operand.vmem [shape: f32[128,16], index: 1, kind: input, shape index: {}]   ;;  %s855_s2 = inlined_call_operand.vmem [shape: f32[1,16], index: 2, kind: input, shape index: {}]   ;;  %s856_s3 = inlined_call_operand.vmem [shape: f32[128,16], index: 3, kind: input, shape index: {}]   ;;  %s857_s4 = inlined_call_operand.vmem [shape: f32[1,16], index: 4, kind: input, shape index: {}]   ;;  %s858_s5 = inlined_call_operand.vmem [shape: f32[128,16], index: 5, kind: input, shape index: {}]   ;;  %s859_s6 = inlined_call_operand.vmem [shape: f32[1,16], index: 6, kind: input, shape index: {}]   ;;  %s860_s7 = inlined_call_operand.hbm [shape: f32[8,128], index: 7, kind: output, shape index: {}]  }
   0x1   :  { %v29_v0 = vld [vmem:[%s854_s1] sm:$0xff]  ;;  %v30_v1 = vld [vmem:[%s854_s1 + $0x8] sm:$0xff]  ;;  %v31_v2 = vld [vmem:[%s854_s1 + $0x10] sm:$0xff]  ;;  %508 = vmatprep.subr.bf16.mxu0 %v611_v3  ;;  %435 = vmatprep.mubr.msk.f32.mxu0 %vm612_vm0, %v613_v6 }
   0x2   :  { %v509_v4 = vpack.c.bf16 %v30_v1, %v29_v0  ;;  %v32_v5 = vld [vmem:[%s854_s1 + $0x18] sm:$0xff]  ;;  %532 = vmatprep.subr.bf16.mxu1 %v611_v3  ;;  %470 = vmatprep.mubr.msk.f32.mxu1 %vm612_vm0, %v613_v6  ;;  %v33_v8 = vld [vmem:[%s854_s1 + $0x20] sm:$0xff]  ;;  %v34_v9 = vld [vmem:[%s854_s1 + $0x28] sm:$0xff] }
   0x3   :  { %v512_v7 = vpack.c.bf16 %v32_v5, %v31_v2  ;;  %v27_v10 = vld [vmem:[%s853_s0] sm:$0xff] }
   0x4   :  { %510 = vmatpush3.bf16.msra.mxu0 %v509_v4  ;;  %28 = vst [vmem:[#allocation2] sm:$0xff] %v27_v10 }
   0x5   :  { %511 = vmatprep.subr.bf16.mxu0 %v611_v3 }
   0x6   :  { %12 = vsyncpa [#allocation3], 0  ;;  %v515_v11 = vpack.c.bf16 %v34_v9, %v33_v8  ;;  %v35_v12 = vld [vmem:[%s854_s1 + $0x30] sm:$0xff]  ;;  %v36_v13 = vld [vmem:[%s854_s1 + $0x38] sm:$0xff]  ;;  %s614_s19 = smov 32   ;;  %vm129_vm1 = vcmask 392448  }
   0x7   :  { %v518_v14 = vpack.c.bf16 %v36_v13, %v35_v12  ;;  %v37_v15 = vld [vmem:[%s854_s1 + $0x40] sm:$0xff]  ;;  %v38_v16 = vld [vmem:[%s854_s1 + $0x48] sm:$0xff]  ;;  %v39_v18 = vld [vmem:[%s854_s1 + $0x50] sm:$0xff]  ;;  %s615_s24 = smov 48   ;;  %vm231_vm2 = vcmask 523648   ;;  %s617_s26 = smov [#allocation2]  }
   0x8   :  { %513 = vmatpush3.bf16.msra.mxu0 %v512_v7  ;;  %v521_v17 = vpack.c.bf16 %v38_v16, %v37_v15  ;;  %v40_v19 = vld [vmem:[%s854_s1 + $0x58] sm:$0xff]  ;;  %v41_v21 = vld [vmem:[%s854_s1 + $0x60] sm:$0xff]  ;;  %v42_v22 = vld [vmem:[%s854_s1 + $0x68] sm:$0xff]  ;;  %s341_s27 = sshll.u32 %s617_s26, 4  ;;  %vm333_vm3 = vcmask 654848   ;;  %s342_s27 = int_to_ptr.vmem [resolvable:$true] %s341_s27 }
   0x9   :  { %514 = vmatprep.subr.bf16.mxu0 %v611_v3  ;;  %v524_v20 = vpack.c.bf16 %v40_v19, %v39_v18  ;;  %v527_v23 = vpack.c.bf16 %v42_v22, %v41_v21  ;;  %v43_v24 = vld [vmem:[%s854_s1 + $0x70] sm:$0xff]  ;;  %v44_v25 = vld [vmem:[%s854_s1 + $0x78] sm:$0xff]  ;;  %v131_v27 = vld [vmem:[%s856_s3] sm:$0xff]  ;;  %s587_s28 = scalar_lea.vmem %s342_s27, 128  ;;  %p592_p1 = scmp.lt.s32.totalorder %s342_s27, %s342_s27 }
   0xa   :  { %v530_v26 = vpack.c.bf16 %v44_v25, %v43_v24  ;;  %v132_v28 = vld [vmem:[%s856_s3 + $0x8] sm:$0xff]  ;;  %v133_v29 = vld [vmem:[%s856_s3 + $0x10] sm:$0xff]  ;;  %v134_v31 = vld [vmem:[%s856_s3 + $0x18] sm:$0xff]  ;;  %p588_p0 = scmp.ne.s32.totalorder %s342_s27, %s587_s28  ;;  %p593_p2 = scmp.lt.s32.totalorder %s587_s28, %s587_s28 }
   0xb   :  { %v533_v30 = vpack.c.bf16 %v132_v28, %v131_v27  ;;  %v536_v32 = vpack.c.bf16 %v134_v31, %v133_v29  ;;  %v135_v33 = vld [vmem:[%s856_s3 + $0x20] sm:$0xff]  ;;  %v136_v34 = vld [vmem:[%s856_s3 + $0x28] sm:$0xff]  ;;  %v137_v36 = vld [vmem:[%s856_s3 + $0x30] sm:$0xff] }
   0xc   :  { %516 = vmatpush3.bf16.msra.mxu0 %v515_v11  ;;  %v539_v35 = vpack.c.bf16 %v136_v34, %v135_v33  ;;  %v138_v37 = vld [vmem:[%s856_s3 + $0x38] sm:$0xff]  ;;  %v139_v39 = vld [vmem:[%s856_s3 + $0x40] sm:$0xff]  ;;  %v140_v40 = vld [vmem:[%s856_s3 + $0x48] sm:$0xff]  ;;  %p594_p3 = por %p593_p2, %p592_p1 }
   0xd   :  { %517 = vmatprep.subr.bf16.mxu0 %v611_v3  ;;  %534 = vmatpush3.bf16.msra.mxu1 %v533_v30  ;;  %v542_v38 = vpack.c.bf16 %v138_v37, %v137_v36  ;;  %v545_v41 = vpack.c.bf16 %v140_v40, %v139_v39  ;;  %v141_v42 = vld [vmem:[%s856_s3 + $0x50] sm:$0xff]  ;;  %v142_v43 = vld [vmem:[%s856_s3 + $0x58] sm:$0xff]  ;;  %v143_v45 = vld [vmem:[%s856_s3 + $0x60] sm:$0xff] }
   0xe   :  { %535 = vmatprep.subr.bf16.mxu1 %v611_v3  ;;  %v548_v44 = vpack.c.bf16 %v142_v43, %v141_v42  ;;  %v144_v46 = vld [vmem:[%s856_s3 + $0x68] sm:$0xff]  ;;  %v145_v48 = vld [vmem:[%s856_s3 + $0x70] sm:$0xff]  ;;  %v146_v49 = vld [vmem:[%s856_s3 + $0x78] sm:$0xff]  ;;  %p595_p4 = pnand %p594_p3, %p588_p0 }
   0xf   :  { %v551_v47 = vpack.c.bf16 %v144_v46, %v143_v45  ;;  %v554_v50 = vpack.c.bf16 %v146_v49, %v145_v48  ;;  %v349_v51 = vld [vmem:[%s855_s2] ss:$0 sm:$0xff]  ;;  %v234_v60 = vld [vmem:[%s858_s5 + $0x8] sm:$0xff]  ;;  %v235_v61 = vld [vmem:[%s858_s5 + $0x10] sm:$0xff] }
  0x10   :  { %519 = vmatpush3.bf16.msra.mxu0 %v518_v14  ;;  %v233_v59 = vld [vmem:[%s858_s5] sm:$0xff]  ;;  %v236_v63 = vld [vmem:[%s858_s5 + $0x18] sm:$0xff]  ;;  %v238_v2 = vld [vmem:[%s858_s5 + $0x28] sm:$0xff] }
  0x11   :  { %520 = vmatprep.subr.bf16.mxu0 %v611_v3  ;;  %537 = vmatpush3.bf16.msra.mxu1 %v536_v32  ;;  %v557_v62 = vpack.c.bf16 %v234_v60, %v233_v59  ;;  %v560_v0 = vpack.c.bf16 %v236_v63, %v235_v61  ;;  %v237_v1 = vld [vmem:[%s858_s5 + $0x20] sm:$0xff]  ;;  %v239_v5 = vld [vmem:[%s858_s5 + $0x30] sm:$0xff]  ;;  %v242_v9 = vld [vmem:[%s858_s5 + $0x48] sm:$0xff] }
  0x12   :  { %538 = vmatprep.subr.bf16.mxu1 %v611_v3  ;;  %v563_v4 = vpack.c.bf16 %v238_v2, %v237_v1  ;;  %v241_v8 = vld [vmem:[%s858_s5 + $0x40] sm:$0xff]  ;;  %v243_v11 = vld [vmem:[%s858_s5 + $0x50] sm:$0xff]  ;;  %v244_v12 = vld [vmem:[%s858_s5 + $0x58] sm:$0xff] }
  0x13   :  { %v572_v13 = vpack.c.bf16 %v244_v12, %v243_v11  ;;  %v245_v14 = vld [vmem:[%s858_s5 + $0x60] sm:$0xff]  ;;  %v246_v15 = vld [vmem:[%s858_s5 + $0x68] sm:$0xff]  ;;  %v248_v18 = vld [vmem:[%s858_s5 + $0x78] sm:$0xff] }
  0x14   :  { %522 = vmatpush3.bf16.msra.mxu0 %v521_v17  ;;  %v575_v16 = vpack.c.bf16 %v246_v15, %v245_v14  ;;  %v247_v17 = vld [vmem:[%s858_s5 + $0x70] sm:$0xff] }
  0x15   :  { %523 = vmatprep.subr.bf16.mxu0 %v611_v3  ;;  %540 = vmatpush3.bf16.msra.mxu1 %v539_v35  ;;  %v578_v19 = vpack.c.bf16 %v248_v18, %v247_v17 }
  0x16   :  { %541 = vmatprep.subr.bf16.mxu1 %v611_v3 }
  0x18   :  { %525 = vmatpush3.bf16.msra.mxu0 %v524_v20  ;;  %v350_v20 = vld [vmem:[%s857_s4] ss:$0 sm:$0xff]  ;;  %s616_s4 = smov 64  }
  0x19   :  { %526 = vmatprep.subr.bf16.mxu0 %v611_v3  ;;  %543 = vmatpush3.bf16.msra.mxu1 %v542_v38 }
  0x1a   :  { %544 = vmatprep.subr.bf16.mxu1 %v611_v3 }
  0x1c   :  { %528 = vmatpush3.bf16.msra.mxu0 %v527_v23 }
  0x1d   :  { %529 = vmatprep.subr.bf16.mxu0 %v611_v3  ;;  %546 = vmatpush3.bf16.msra.mxu1 %v545_v41 }
  0x1e   :  { %547 = vmatprep.subr.bf16.mxu1 %v611_v3 }
  0x20   :  { %531 = vmatpush3.bf16.msra.mxu0 %v530_v26 }
  0x21   :  { %556 = vmatprep.subr.bf16.mxu0 %v611_v3  ;;  %549 = vmatpush3.bf16.msra.mxu1 %v548_v44 }
  0x22   :  { %550 = vmatprep.subr.bf16.mxu1 %v611_v3 }
  0x23   :  { %436 = vmatmul.mubr.f32.vlgmr.msra.gmra.mrb[0].mxu0 %v27_v10  ;;  %v569_v10 = vpack.c.bf16 %v242_v9, %v241_v8 }
  0x24   :  { %505 = vmatprep.mubr.msk.f32.mxu0 %vm612_vm0, %v613_v6  ;;  %558 = vmatpush3.bf16.msra.mxu0 %v557_v62  ;;  %v240_v6 = vld [vmem:[%s858_s5 + $0x38] sm:$0xff] }
  0x25   :  { %552 = vmatpush3.bf16.msra.mxu1 %v551_v47  ;;  %559 = vmatprep.subr.bf16.mxu0 %v611_v3  ;;  %v566_v7 = vpack.c.bf16 %v240_v6, %v239_v5 }
  0x26   :  { %553 = vmatprep.subr.bf16.mxu1 %v611_v3 }
  0x28   :  { %561 = vmatpush3.bf16.msra.mxu0 %v560_v0 }
  0x29   :  { %555 = vmatpush3.bf16.msra.mxu1 %v554_v50  ;;  %562 = vmatprep.subr.bf16.mxu0 %v611_v3 }
  0x2c   :  { %564 = vmatpush3.bf16.msra.mxu0 %v563_v4 }
  0x2d   :  { %565 = vmatprep.subr.bf16.mxu0 %v611_v3 }
  0x30   :  { %567 = vmatpush3.bf16.msra.mxu0 %v566_v7 }
  0x31   :  { %568 = vmatprep.subr.bf16.mxu0 %v611_v3 }
  0x34   :  { %570 = vmatpush3.bf16.msra.mxu0 %v569_v10 }
  0x35   :  { %571 = vmatprep.subr.bf16.mxu0 %v611_v3 }
  0x38   :  { %573 = vmatpush3.bf16.msra.mxu0 %v572_v13 }
  0x39   :  { %574 = vmatprep.subr.bf16.mxu0 %v611_v3 }
  0x3c   :  { %576 = vmatpush3.bf16.msra.mxu0 %v575_v16 }
  0x3d   :  { %577 = vmatprep.subr.bf16.mxu0 %v611_v3  ;;  %v351_v3 = vld [vmem:[%s859_s6] ss:$0 sm:$0xff] }
  0x40   :  { %579 = vmatpush3.bf16.msra.mxu0 %v578_v19 }
  0xf6   :  { %v119_v52 = vpop.f32.mrb[0].mxu0 }
  0xf7   :  { %v120_v53 = vadd.f32 %v349_v51, %v119_v52  ;;  %v437_v54 = vpop.f32.mrb[1].mxu0 }
  0xf9   :  { %v123_v55 = vmul.f32 0.01, %v120_v53 }
  0xfb   :  { %v124_v56 = vmax.f32 %v120_v53, %v123_v55 }
  0xfd   :  { %126 = vrot.lane.b32.xlu0 %v124_v56, %s614_s19 }
 0x16f   :  { %v127_v57 = vpop.permute.xlu0 %126 }
 0x170   :  { %130 = vst.msk [vmem:[#allocation2] sm:$0xff] %vm129_vm1, %v127_v57 }
 0x177   :  { %v148_v58 = vld [vmem:[#allocation2] sm:$0xff] }
 0x178   :  { %471 = vmatmul.mubr.f32.vlgmr.msra.gmra.mrb[0].mxu1 %v148_v58 }
 0x24b   :  { %v221_v21 = vpop.f32.mrb[0].mxu1 }
 0x24c   :  { %v222_v22 = vadd.f32 %v350_v20, %v221_v21  ;;  %v472_v23 = vpop.f32.mrb[1].mxu1 }
 0x24e   :  { %v225_v24 = vmul.f32 0.01, %v222_v22 }
 0x250   :  { %v226_v25 = vmax.f32 %v222_v22, %v225_v24 }
 0x252   :  { %228 = vrot.lane.b32.xlu0 %v226_v25, %s615_s24 }
 0x2c4   :  { %v229_v26 = vpop.permute.xlu0 %228 }
 0x2c5   :  { %232 = vst.msk [vmem:[#allocation2] sm:$0xff] %vm231_vm2, %v229_v26 }
 0x2cc   :  { %v250_v27 = vld [vmem:[#allocation2] sm:$0xff] }
 0x2cd   :  { %506 = vmatmul.mubr.f32.vlgmr.msra.gmra.mrb[2].mxu0 %v250_v27 }
 0x3a0   :  { %v323_v28 = vpop.f32.mrb[2].mxu0 }
 0x3a1   :  { %v324_v29 = vadd.f32 %v351_v3, %v323_v28  ;;  %v507_v30 = vpop.f32.mrb[3].mxu0 }
 0x3a3   :  { %v327_v31 = vmul.f32 0.01, %v324_v29 }
 0x3a5   :  { %v328_v32 = vmax.f32 %v324_v29, %v327_v31 }
 0x3a7   :  { %330 = vrot.lane.b32.xlu1 %v328_v32, %s616_s4 }
 0x419   :  { %v331_v33 = vpop.permute.xlu1 %330 }
 0x41a   :  { %334 = vst.msk [vmem:[#allocation2] sm:$0xff] %vm333_vm3, %v331_v33 }
 0x41b   :  { %598 = shalt.err (!%p595_p4)
}
 0x41c   :  { %s599_s30 = scalar_lea.hbm %s860_s7, 128 }
 0x41d   :  { %p600_p5 = scmp.ne.s32.totalorder %s860_s7, %s599_s30  ;;  %p603_p6 = scmp.lt.u32.totalorder %s599_s30, %s860_s7 }
 0x41f   :  { %p605_p7 = pnand %p603_p6, %p600_p5 }
 0x421   :  { %608 = shalt.err (!%p605_p7)
}
 0x422   :  { %344 = dma.vmem_to_hbm [thread:$0]  %s342_s27, 128, %s860_s7, [#allocation3]  }
 0x423   :  { %609 = dma.done.wait [#allocation3], 128  }
 0x424   :  { %610 = vsyncadd [#allocation3], 4294967168 }
 0x425   :  { %348 = vsyncpa [#allocation3], 1 }

</bundles_post_ra>
